<compile_context>
chip_gen: v7x
topology: tpu7x:2x2x1
jax: 0.10.0
libtpu: 0.0.40
codegen_flags: <defaults>
</compile_context>

<pallas_src>
import functools

import jax
import jax.numpy as jnp
from jax.experimental import pallas as pl
from jax.experimental.pallas import tpu as pltpu

PVDBOW = "PVDBOW"
PVDMMEAN = "PVDMmean"
PVDMCONCAT = "PVDMconcat"

_LANE = 128
_SUBLANE_BF16 = 16
_VMEM_BUDGET_BYTES = 48 << 20   # conservative: v7x has 64 MiB physical VMEM per TC


def _round_up(x: int, m: int) -> int:
    return ((x + m - 1) // m) * m


def _cdiv(a: int, b: int) -> int:
    return -(-a // b)


# ----------------------------- Pallas kernel -------------------------------
def _pv_forward_kernel(h_ref, r_ref, o_ref):
    # out tile j = h @ R[:, j*TN:(j+1)*TN]; bf16 operands, f32 MXU accumulation.
    o_ref[...] = jnp.dot(
        h_ref[...], r_ref[...], preferred_element_type=jnp.float32
    ).astype(o_ref.dtype)


# --------------------------- tile / prep helpers ----------------------------
def _choose_tile_n(n_words, d_pad, b_pad, tn=None):
    """Lane-dense vocab tile: as big as the VMEM budget allows, but keep >= 2
    tiles (v7x dual TensorCore) and keep vocab-padding waste small."""
    n128 = _round_up(n_words, _LANE)
    # VMEM per tile column: double-buffered bf16 R tile + double-buffered f32 out tile.
    per_col = 2 * d_pad * 2 + 2 * b_pad * 4
    resident = b_pad * d_pad * 2                      # h: resident, single-buffered
    budget = int(_VMEM_BUDGET_BYTES / 1.2) - resident  # ~20% headroom
    tile_max = max(_LANE, (budget // per_col) // _LANE * _LANE)
    if tn is not None:
        tile_max = min(tile_max, max(_LANE, _round_up(tn, _LANE)))
    n_tiles = _cdiv(n128, tile_max)
    if n128 >= 2 * _LANE:
        n_tiles = max(n_tiles, 2)   # let the "parallel" axis feed both v7x TCs
    return max(_LANE, _round_up(_cdiv(n128, n_tiles), _LANE))


def prepare_projection(R, *, tn=None, batch_hint=16):
    """One-time preparation of R for streaming:
       * pad dim to a multiple of 16 only (bf16 sublane packing / aligned DMA),
       * pad vocab to a multiple of the chosen tile,
       * cast to bf16 (halves HBM read traffic; kernel accumulates in f32).
    Returns (R_stream, tile_n)."""
    dim, n_words = R.shape
    d_pad = _round_up(dim, _SUBLANE_BF16)
    b_pad = _round_up(max(int(batch_hint), 1), _SUBLANE_BF16)
    tile_n = _choose_tile_n(n_words, d_pad, b_pad, tn=tn)
    v_pad = _round_up(n_words, tile_n)
    r_stream = jnp.pad(R, ((0, d_pad - dim), (0, v_pad - n_words))).astype(jnp.bfloat16)
    return r_stream, tile_n


@functools.partial(jax.jit, static_argnames=("n_words", "tile_n"))
def _pv_matmul(h, r_stream, *, n_words, tile_n):
    """out[:B, :n_words] = h @ R, with R already padded/bf16 and streamed by tile."""
    B, dim = h.shape
    d_pad, v_pad = r_stream.shape
    assert v_pad % tile_n == 0 and tile_n % _LANE == 0, (v_pad, tile_n)
    assert dim <= d_pad, (dim, d_pad)

    b_pad = _round_up(B, _SUBLANE_BF16)
    h_p = jnp.pad(h.astype(jnp.bfloat16), ((0, b_pad - B), (0, d_pad - dim)))

    grid = (v_pad // tile_n,)

    flops = 2 * b_pad * d_pad * v_pad
    bytes_accessed = 2 * d_pad * v_pad + 2 * b_pad * d_pad + 4 * b_pad * v_pad
    # double-buffered bf16 R tile + double-buffered f32 out tile + resident bf16 h.
    vmem_bytes = 2 * (d_pad * tile_n * 2) + 2 * (b_pad * tile_n * 4) + b_pad * d_pad * 2
    vmem_limit = int(min(max(int(vmem_bytes * 1.5), 16 << 20), 64 << 20))

    out_p = pl.pallas_call(
        _pv_forward_kernel,
        out_shape=jax.ShapeDtypeStruct((b_pad, v_pad), jnp.float32),
        grid_spec=pltpu.PrefetchScalarGridSpec(
            num_scalar_prefetch=0,
            grid=grid,
            in_specs=[
                pl.BlockSpec((b_pad, d_pad), lambda j: (0, 0)),    # h: resident
                # TODO(synk): add pipeline_mode=pl.Buffered(3) here if a profile
                # still shows exposed DMA at this tile size.
                pl.BlockSpec((d_pad, tile_n), lambda j: (0, j)),   # R tile: streamed
            ],
            out_specs=pl.BlockSpec((b_pad, tile_n), lambda j: (0, j)),
        ),
        compiler_params=pltpu.CompilerParams(
            dimension_semantics=("parallel",),
            vmem_limit_bytes=vmem_limit,
        ),
        cost_estimate=pl.CostEstimate(
            flops=flops, transcendentals=0, bytes_accessed=bytes_accessed
        ),
    )(h_p, r_stream)

    if b_pad == B and v_pad == n_words:
        return out_p
    return out_p[:B, :n_words]


# ------------------------------ module glue --------------------------------
def init_paragraph_vector_params(key, n_words, n_docs, dim, context_size, variant,
                                 *, tn=None, batch_hint=16):
    kP, kR, kQ = jax.random.split(key, 3)
    if variant == PVDMCONCAT:
        p_rows = 2 * context_size * n_words
        P = jnp.sqrt(2.0 / (p_rows + dim)) * jax.random.normal(kP, (p_rows, dim), jnp.float32)
    elif variant == PVDMMEAN:
        P = jnp.sqrt(2.0 / (n_words + dim)) * jax.random.normal(kP, (n_words, dim), jnp.float32)
    elif variant == PVDBOW:
        P = jnp.zeros((n_words, dim), jnp.float32)
    else:
        raise NotImplementedError(variant)
    R = jnp.sqrt(2.0 / (n_words + dim)) * jax.random.normal(kR, (dim, n_words), jnp.float32)
    Q = jnp.sqrt(2.0 / (n_docs + dim)) * jax.random.normal(kQ, (n_docs, dim), jnp.float32)
    # One-time prep: no per-forward jnp.pad / cast of the big matrix.
    R_stream, tile_n = prepare_projection(R, tn=tn, batch_hint=batch_hint)
    return {"P": P, "R": R, "Q": Q, "R_stream": R_stream, "tile_n": tile_n}


def _hidden(params, context_ids, doc_ids, *, variant, n_words):
    Q, P = params["Q"], params["P"]
    h = Q[doc_ids, :]  # (B, dim)
    if variant == PVDBOW:
        pass  # no context term
    elif variant == PVDMMEAN:
        h = h + jnp.sum(P[context_ids, :], axis=1)
    elif variant == PVDMCONCAT:
        # onehot(ctx).reshape(B, 2*nu*V) @ P  ==  sum_j P[j*V + ctx[:, j]]
        offsets = jnp.arange(context_ids.shape[1], dtype=context_ids.dtype) * n_words
        h = h + jnp.sum(P[context_ids + offsets[None, :], :], axis=1)
    else:
        raise NotImplementedError(variant)
    return h


def paragraph_vector_forward(params, context_ids, doc_ids, *, variant, n_words):
    """Exact semantics of ParagraphVector.forward (R streamed in bf16)."""
    # TODO(synk): the tiny Q/P row gathers stay as XLA glue; fusing them into the
    # kernel via scalar prefetch + pl.Element row BlockSpecs is a further option.
    h = _hidden(params, context_ids, doc_ids, variant=variant, n_words=n_words)
    return _pv_matmul(h, params["R_stream"], n_words=n_words, tile_n=params["tile_n"])


def paragraph_vector_reference(params, context_ids, doc_ids, *, variant, n_words,
                               quantized=False):
    h = _hidden(params, context_ids, doc_ids, variant=variant, n_words=n_words)
    R = params["R"]
    if quantized:  # same bf16 operands / f32 accumulation as the kernel
        return jnp.dot(h.astype(jnp.bfloat16), R.astype(jnp.bfloat16),
                       preferred_element_type=jnp.float32)
    return jnp.dot(h, R, precision=jax.lax.Precision.HIGHEST)


# --------------------------------- main -------------------------------------
if __name__ == "__main__":
    # Small shapes consistent with the module defaults (scaled down), chosen to
    # exercise the multi-tile vocab grid, the vocab padding path and all variants.
    n_words = 640      # vocabulary size
    n_docs = 16
    dim = 50           # module default dim=50 (padded only to 64 inside the prep)
    context_size = 3   # nu -> context window 2*nu = 6
    batch = 8

    key = jax.random.PRNGKey(0)
    k_ctx, k_doc, k_params = jax.random.split(key, 3)

    context_ids = jax.random.randint(k_ctx, (batch, 2 * context_size), 0, n_words, jnp.int32)
    doc_ids = jax.random.randint(k_doc, (batch,), 0, n_docs, jnp.int32)

    for variant in (PVDBOW, PVDMMEAN, PVDMCONCAT):
        # tn=256 forces a multi-tile vocab grid even at this toy vocabulary.
        params = init_paragraph_vector_params(
            k_params, n_words, n_docs, dim, context_size, variant,
            tn=256, batch_hint=batch)
        out = paragraph_vector_forward(
            params, context_ids, doc_ids, variant=variant, n_words=n_words)
        out = jax.block_until_ready(out)
        assert out.shape == (batch, n_words), (variant, out.shape)

        # Tight check vs a reference using the same bf16-quantized operands.
        ref_q = paragraph_vector_reference(
            params, context_ids, doc_ids, variant=variant, n_words=n_words, quantized=True)
        assert jnp.allclose(out, ref_q, atol=1e-4, rtol=1e-4), variant

        # Looser check vs the full-precision reference (R is streamed in bf16).
        ref_f32 = paragraph_vector_reference(
            params, context_ids, doc_ids, variant=variant, n_words=n_words)
        assert jnp.allclose(out, ref_f32, atol=1e-2, rtol=1e-2), variant

    print("KERNEL_OK")
</pallas_src>

<mosaic_0001>
module attributes {stable_mosaic.version = 11 : i64} {
  func.func @_pv_forward_kernel(%arg0: i32, %arg1: memref<16x64xbf16, #tpu.memory_space<vmem>>, %arg2: memref<64x256xbf16, #tpu.memory_space<vmem>>, %arg3: memref<16x256xf32, #tpu.memory_space<vmem>>) attributes {dimension_semantics = [#tpu.dimension_semantics<parallel>], iteration_bounds = array<i64: 3>, scalar_prefetch = 0 : i64, scratch_operands = 0 : i64, tpu.core_type = #tpu.core_type<tc>, window_params = [{pipeline_mode = #tpu.pipeline_mode<synchronous>, transform_indices = @transform_0, window_bounds = array<i64: 16, 64>}, {transform_indices = @transform_1, window_bounds = array<i64: 64, 256>}, {transform_indices = @transform_2, window_bounds = array<i64: 16, 256>}]} {
    %c0 = arith.constant 0 : index
    %c0_0 = arith.constant 0 : index
    %0 = vector.load %arg1[%c0, %c0_0] : memref<16x64xbf16, #tpu.memory_space<vmem>>, vector<16x64xbf16>
    %c0_1 = arith.constant 0 : index
    %c0_2 = arith.constant 0 : index
    %1 = vector.load %arg2[%c0_1, %c0_2] : memref<64x256xbf16, #tpu.memory_space<vmem>>, vector<64x256xbf16>
    %cst = arith.constant dense<0.000000e+00> : vector<16x256xf32>
    %2 = tpu.matmul %0, %1, %cst {dimension_numbers = #tpu.dot_dimension_numbers<[1], [0], [0], [1], [0, 0, 1, 1], [], []>} : vector<16x64xbf16>, vector<64x256xbf16>, vector<16x256xf32> -> vector<16x256xf32>
    %c0_3 = arith.constant 0 : index
    %c0_4 = arith.constant 0 : index
    %3 = vector.load %arg3[%c0_3, %c0_4] : memref<16x256xf32, #tpu.memory_space<vmem>>, vector<16x256xf32>
    tpu.vector_store %arg3[%c0_3, %c0_4], %2 {strides = array<i32>} : memref<16x256xf32, #tpu.memory_space<vmem>>, vector<16x256xf32>,
    return
  }
  func.func @transform_0(%arg0: i32) -> (i32, i32) {
    %c0_i32 = arith.constant 0 : i32
    %c0_i32_0 = arith.constant 0 : i32
    %c0_i32_1 = arith.constant 0 : i32
    return %c0_i32, %c0_i32_0 : i32, i32
  }
  func.func @transform_1(%arg0: i32) -> (i32, i32) {
    %c0_i32 = arith.constant 0 : i32
    %c0_i32_0 = arith.constant 0 : i32
    return %c0_i32, %arg0 : i32, i32
  }
  func.func @transform_2(%arg0: i32) -> (i32, i32) {
    %c0_i32 = arith.constant 0 : i32
    %c0_i32_0 = arith.constant 0 : i32
    return %c0_i32, %arg0 : i32, i32
  }
}

</mosaic_0001>

<bundles_post_ra>
// kernel: _pv_matmul.1
= control target key start
LH: loop header
LB: loop body
LE: loop exit
PB: predicated region body
PF: predicated region fallthrough
CT: control target
= control target key end

     0   :  { %7 = vsyncpa [#allocation3], 0  ;;  %s656_s0 = inlined_call_operand.vmem [shape: bf16[16,64], index: 0, kind: input, shape index: {}]   ;;  %s657_s1 = inlined_call_operand.hbm [shape: bf16[64,768], index: 1, kind: input, shape index: {}]   ;;  %s658_s2 = inlined_call_operand.vmem [shape: f32[16,768], index: 2, kind: output, shape index: {}]  }
   0x1   :  { %9 = vsyncpa [#allocation3 + $0x1], 0  ;;  %s530_s9 = smov 0   ;;  %s532_s10 = smov 0  }
   0x2   :  { %s534_s11 = smov 0   ;;  %s536_s12 = smov 0  }
   0x3 LB: > { %s549_s13 = sadd.s32 4294967295, %s508_s12   ;;  %s552_s14 = sadd.s32 1, %s508_s12   ;;  %s508_s12 = sphi %s536_s12, %s667_s12   ;;  %s504_s11 = sphi %s534_s11, %s666_s11   ;;  %s500_s10 = sphi %s532_s10, %s665_s10   ;;  %s496_s9 = sphi %s530_s9, %s664_s9  }
   0x4   : > { %s40_s15 = ssub.s32 %s508_s12, %s552_s14  ;;  %s43_s16 = sadd.s32 1, %s504_s11 }
   0x5   : > { %p41_p0 = scmp.eq.s32.totalorder %s40_s15, 0  ;;  %p50_p1 = scmp.ne.s32.totalorder %s504_s11, %s500_s10 }
   0x6   : > { %p51_p2 = scmp.eq.s32.totalorder %s508_s12, 0  ;;  %p56_p3 = scmp.ne.s32.totalorder %s500_s10, %s496_s9 }
   0x7   : > { %s562_s17 = scalar_select %p41_p0, %s504_s11, %s43_s16  }
   0x8   : > { %p564_p4 = por %p51_p2, %p50_p1  ;;  %p57_p5 = scmp.eq.s32.totalorder %s549_s13, 0 }
   0x9   : > { %p80_p6 = scmp.eq.s32.totalorder %s549_s13, 2  ;;  %p394_p8 = scmp.lt.s32.totalorder %s508_s12, 3 }
   0xa   : > { %p570_p7 = por %p57_p5, %p56_p3  ;;  %s109_s21 = sand.u32 1, %s504_s11  }
   0xb   : > { %p575_p9 = por %p80_p6, %p50_p1  ;;  %s365_s22 = sshll.u32 %s109_s21, 6 }
   0xc   : > { %s386_s23 = sshll.u32 %s508_s12, 7  ;;  %s113_s27 = scalar_lea.vmem [#allocation2], %s365_s22 }
   0xd   : > { %s661_s20 = scalar_select %p575_p9, 1, 0 }
   0xe   : > { %s584_s26 = scalar_lea.hbm %s657_s1, %s386_s23  ;;  %s120_s28 = sshll.u32 %s113_s27, 4  ;;  %s586_s28 = int_to_ptr.vmem [resolvable:$true] %s120_s28 }
   0xf   : > { %p590_p10 = pnand %p394_p8, %p564_p4  ;;  %s594_s30 = scalar_lea.sflag [#allocation3], %s109_s21 }
  0x10   : > { %s444_s3 = scalar_lea.hbm %s584_s26, 1024  ;;  %s449_s6 = scalar_lea.hbm %s657_s1, 3072 }
  0x11   : > { %p445_p11 = scmp.ne.s32.totalorder %s584_s26, %s444_s3  ;;  %p446_p12 = pneg %p590_p10 }
  0x12   : > { %p450_p1 = scmp.lt.u32.totalorder %s584_s26, %s657_s1  ;;  %p451_p2 = scmp.lt.u32.totalorder %s449_s6, %s444_s3 }
  0x13   : > { %p447_p13 = pnand %p446_p12, %p445_p11  ;;  %p453_p4 = scmp.lt.u32.totalorder %s444_s3, %s584_s26 }
  0x14   : > { %p452_p3 = por %p451_p2, %p450_p1 }
  0x15   : > { %p448_p0 = pneg %p447_p13 }
  0x16   : > { %p454_p5 = por %p453_p4, %p452_p3 }
  0x18   : > { %p455_p6 = pnand %p454_p5, %p448_p0 }
  0x1a   : > { %458 = shalt.err (!%p455_p6)
}
  0x1b   : > { %s459_s9 = scalar_lea.vmem %s586_s28, 1024  ;;  %s510_s15 = smov [#allocation2]  }
  0x1c   : > { %p460_p8 = scmp.ne.s32.totalorder %s586_s28, %s459_s9  ;;  %s464_s16 = sshll.u32 %s510_s15, 4  ;;  %s465_s16 = int_to_ptr.vmem [resolvable:$false] %s464_s16 }
  0x1d   : > { %s466_s18 = scalar_lea.vmem %s465_s16, 2048  ;;  %p467_p9 = scmp.lt.s32.totalorder %s586_s28, %s465_s16 }
  0x1e   : > { %p462_p11 = pnand %p460_p8, %p446_p12  ;;  %p468_p1 = scmp.lt.s32.totalorder %s466_s18, %s459_s9 }
  0x20   : > { %p463_p13 = pneg %p462_p11  ;;  %p469_p2 = por %p468_p1, %p467_p9 }
  0x22   : > { %p470_p3 = pnand %p469_p2, %p463_p13 }
  0x24   : > { %473 = shalt.err (!%p470_p3)
}
  0x25   : > { %s511_s21 = smov 384   ;;  %s512_s22 = smov 128  }
  0x26   : > { %s513_s23 = smov 8   ;;  %p368_p12 = scmp.ge.s32.totalorder %s508_s12, 1 }
  0x27   : > { %393 = dma.hbm_to_vmem [thread:$0]  (!%p590_p10), %s584_s26, 1024, %s586_s28, %s594_s30, %s511_s21, %s512_s22, %s513_s23  }
  0x28   : > { %p128_p0 = scmp.lt.s32.totalorder %s508_s12, 4 }
  0x2a   : > { %p129_p4 = pnand %p368_p12, %p128_p0 }
  0x2b   : > { %s625_s24 = sand.u32 (!%p129_p4), 1, %s500_s10  }
  0x2c   : > { %132 = sbr.rel (%p129_p4) target bundleno = 293 (0x125), region = 28  ;;  %s369_s25 = sshll.u32 (!%p129_p4), %s625_s24, 6 }
  0x2d   : > { %s135_s27 = scalar_lea.sflag (!%p129_p4), [#allocation3], %s625_s24  ;;  %s138_s3 = scalar_lea.vmem (!%p129_p4), [#allocation2], %s369_s25 }
  0x33   : > { %491 = dma.done.wait (%p570_p7), %s135_s27, 1024  }
  0x34   : > { %493 = vsyncadd (%p570_p7), %s135_s27, 4294966272  ;;  %v514_v0 = vmov 0   ;;  %v431_v1 = vld [vmem:[%s138_s3 + $0x4] ss:$8 sps:$4 sm:$0xff]   ;;  %v433_v2 = vld [vmem:[%s138_s3] ss:$8 sps:$4 sm:$0xff]  }
  0x35   : > { %252 = vmatprep.mubr.bf16.mxu0 %v514_v0  ;;  %220 = vmatprep.subr.bf16.mxu0 %v431_v1  ;;  %v434_v3 = vld [vmem:[%s138_s3 + $0x14] ss:$8 sps:$4 sm:$0xff]   ;;  %v436_v4 = vld [vmem:[%s138_s3 + $0x10] ss:$8 sps:$4 sm:$0xff]   ;;  %v437_v5 = vld [vmem:[%s138_s3 + $0x24] ss:$8 sps:$4 sm:$0xff]  }
  0x36   : > { %221 = vmatpush1.bf16.msra.mxu0 %v433_v2  ;;  %v439_v6 = vld [vmem:[%s138_s3 + $0x20] ss:$8 sps:$4 sm:$0xff]   ;;  %v440_v7 = vld [vmem:[%s138_s3 + $0x34] ss:$8 sps:$4 sm:$0xff]   ;;  %v442_v8 = vld [vmem:[%s138_s3 + $0x30] ss:$8 sps:$4 sm:$0xff]  }
  0x37   : > { %222 = vmatprep.subr.bf16.mxu0 %v434_v3  ;;  %v443_v9 = vld [vmem:[%s656_s0] sm:$0xff]   ;;  %vm216_vm0 = vcmask 523264   ;;  %s370_s26 = sshll.u32 %s625_s24, 5  ;;  %p663_p7 = scmp.ne.s32.totalorder %s661_s20, 0 }
  0x38   : > { %s157_s28 = scalar_lea.vmem [#allocation4], %s370_s26  ;;  %s387_s29 = sshll.u32 (%p663_p7), %s549_s13, 4 }
  0x39   : > { %s276_s5 = scalar_lea.vmem (%p663_p7), %s658_s2, %s387_s29 }
  0x3a   : > { %223 = vmatpush1.bf16.msra.mxu0 %v436_v4 }
  0x3b   : > { %224 = vmatprep.subr.bf16.mxu0 %v437_v5 }
  0x3e   : > { %225 = vmatpush1.bf16.msra.mxu0 %v439_v6 }
  0x3f   : > { %226 = vmatprep.subr.bf16.mxu0 %v440_v7 }
  0x42   : > { %227 = vmatpush1.bf16.msra.mxu0 %v442_v8 }
  0x45   : > { %380 = vmatmul.mubr.msk.bf16.vlgmr.msra.gmra.mrb[0].mxu0 %vm216_vm0, %v443_v9 }
 0x116   : > { %273 = sbr.rel (!%p663_p7) target bundleno = 293 (0x125), region = 36 }
 0x118   : > { %v254_v10 = vpop.f32.mrb[0].mxu0 }
 0x119   : > { %263 = vst [vmem:[%s157_s28] sm:$0xff] %v254_v10  ;;  %v256_v11 = vpop.f32.mrb[1].mxu0 }
 0x11a   : > { %264 = vst [vmem:[%s157_s28 + $0x8] sm:$0xff] %v256_v11  ;;  %v258_v12 = vpop.f32.mrb[2].mxu0 }
 0x11b   : > { %265 = vst [vmem:[%s157_s28 + $0x10] sm:$0xff] %v258_v12  ;;  %v260_v13 = vpop.f32.mrb[3].mxu0 }
 0x11c   : > { %266 = vst [vmem:[%s157_s28 + $0x18] sm:$0xff] %v260_v13 }
 0x120   : > { %v289_v14 = vld [vmem:[%s157_s28] sm:$0xff] }
 0x121   : > { %v291_v15 = vld [vmem:[%s157_s28 + $0x8] sm:$0xff]  ;;  %290 = vst [vmem:[%s276_s5] sm:$0xff] %v289_v14 }
 0x122   : > { %v293_v16 = vld [vmem:[%s157_s28 + $0x10] sm:$0xff]  ;;  %292 = vst [vmem:[%s276_s5 + $0x8] sm:$0xff] %v291_v15 }
 0x123   : > { %v295_v17 = vld [vmem:[%s157_s28 + $0x18] sm:$0xff]  ;;  %294 = vst [vmem:[%s276_s5 + $0x30] sm:$0xff] %v293_v16 }
 0x124   : > { %296 = vst [vmem:[%s276_s5 + $0x38] sm:$0xff] %v295_v17 }
 0x125 PF: > { %p12_p9 = scmp.ge.s32.totalorder %s552_s14, 5   ;;  %s664_s9 = smov %s500_s10 }
 0x126   : > { %s665_s10 = smov %s504_s11  ;;  %s666_s11 = smov %s562_s17 }
 0x127   : > { %s667_s12 = smov %s552_s14  ;;  %14 = sbr.rel (!%p12_p9) target bundleno = 3 (0x3), region = 91 }
 0x12e   :  { %312 = vsyncpa [#allocation3], 1 }
 0x12f   :  { %314 = vsyncpa [#allocation3 + $0x1], 1 }

</bundles_post_ra>
